<compile_context>
chip_gen: v7x
topology: tpu7x:2x2x1
jax: 0.10.0
libtpu: 0.0.40
codegen_flags: <defaults>
</compile_context>

<pallas_src>
import functools

import jax
import jax.numpy as jnp
from jax.experimental import pallas as pl
from jax.experimental.pallas import tpu as pltpu


TARGET_BLOCK_BYTES = 2 * 1024 * 1024      # ~2 MiB blocks: >=85% of HBM roofline, fits all gens
SMALL_FAST_PATH_ELEMS = 1 << 16           # below this, plain XLA fusion beats a kernel launch
_LANE_CANDIDATES = (4096, 2048, 1024, 512, 256, 128)


def _act_quant_kernel(x_ref, o_ref, *, n):
    # Compute in f32 regardless of input dtype (matches PyTorch's f32 semantics).
    # The reference's where(r == 0, r, r / n) is dropped: r / n is exactly 0 when r == 0.
    x = x_ref[...].astype(jnp.float32)
    r = jnp.round(x * n)                   # round-half-to-even, same as torch.round
    o_ref[...] = (r / n).astype(o_ref.dtype)


def activation_quantize(x, a_bit, *, force_pallas=False):
    """Pallas TPU equivalent of activation_quantize_fn.forward (inference path)."""
    assert a_bit <= 8 or a_bit == 32
    if a_bit == 32:
        return x

    n = float(2 ** a_bit - 1)
    orig_shape = x.shape
    orig_dtype = x.dtype
    total = x.size

    # Small-tensor fast path: pure elementwise chain, XLA fuses it at roofline.
    if total < SMALL_FAST_PATH_ELEMS and not force_pallas:
        r = jnp.round(x.astype(jnp.float32) * n)
        return (r / n).astype(orig_dtype)

    flat = x.reshape(-1)

    # Pick the widest lane count that divides the element count exactly (no pad copy)
    # while keeping at least 8 rows so the block satisfies the (8, 128) constraint.
    lane = None
    for cand in _LANE_CANDIDATES:
        if total % cand == 0 and total // cand >= 8:
            lane = cand
            break

    pad = 0
    if lane is None:
        # Rare ragged case (size not a multiple of 128): minimally pad, slice tail later.
        lane = 512
        chunk = 8 * lane
        padded_total = pl.cdiv(total, chunk) * chunk
        pad = padded_total - total
        flat = jnp.pad(flat, (0, pad))

    rows = flat.shape[0] // lane
    x2d = flat.reshape(rows, lane)

    # Row tile: ~TARGET_BLOCK_BYTES per block, multiple of 8, never exceeding `rows`.
    itemsize = jnp.dtype(orig_dtype).itemsize
    target_rows = max(8, ((TARGET_BLOCK_BYTES // itemsize) // lane) // 8 * 8)
    row_tile = min(target_rows, max(8, (rows // 8) * 8))
    # Prefer >= 2 grid steps so the "parallel" axis can shard across v7x's 2 TensorCores.
    if pl.cdiv(rows, row_tile) < 2 and rows >= 16:
        row_tile = max(8, ((rows // 2) // 8) * 8)

    grid = (pl.cdiv(rows, row_tile),)
    kernel = functools.partial(_act_quant_kernel, n=n)

    out2d = pl.pallas_call(
        kernel,
        out_shape=jax.ShapeDtypeStruct((rows, lane), orig_dtype),
        grid_spec=pltpu.PrefetchScalarGridSpec(
            num_scalar_prefetch=0,
            grid=grid,
            in_specs=[pl.BlockSpec((row_tile, lane), lambda i: (i, 0))],
            out_specs=pl.BlockSpec((row_tile, lane), lambda i: (i, 0)),
        ),
        compiler_params=pltpu.CompilerParams(
            dimension_semantics=("parallel",),
            vmem_limit_bytes=32 * 1024 * 1024,
        ),
    )(x2d)

    out = out2d.reshape(-1)
    if pad:
        out = out[:total]
    return out.reshape(orig_shape)


def _reference(x, a_bit):
    """Pure-JAX reference mirroring the PyTorch module exactly."""
    if a_bit == 32:
        return x
    n = float(2 ** a_bit - 1)
    r = jnp.round(x.astype(jnp.float32) * n)
    return jnp.where(r == 0.0, r, r / n).astype(x.dtype)


if __name__ == "__main__":
    key = jax.random.PRNGKey(0)
    a_bit = 4

    # Small NCHW activation tensor (forced through the Pallas kernel so it is exercised).
    x = jax.random.uniform(key, (2, 4, 16, 16), dtype=jnp.float32)
    out = jax.block_until_ready(activation_quantize(x, a_bit, force_pallas=True))
    ref = _reference(x, a_bit)
    assert out.shape == x.shape and out.dtype == x.dtype
    assert jnp.allclose(out, ref, atol=1e-6), "mismatch vs reference (small)"

    # Medium tensor takes the large-tile Pallas path naturally (multi-step grid).
    x2 = jax.random.uniform(jax.random.PRNGKey(1), (2, 32, 32, 32), dtype=jnp.float32)
    out2 = jax.block_until_ready(activation_quantize(x2, a_bit))
    assert jnp.allclose(out2, _reference(x2, a_bit), atol=1e-6), "mismatch vs reference (medium)"

    # a_bit == 32 identity path.
    out32 = jax.block_until_ready(activation_quantize(x, 32))
    assert jnp.array_equal(out32, x)

    print("KERNEL_OK")
</pallas_src>

<mosaic_0001>
module attributes {stable_mosaic.version = 11 : i64} {
  func.func @_act_quant_kernel(%arg0: i32, %arg1: memref<8x256xf32, #tpu.memory_space<vmem>>, %arg2: memref<8x256xf32, #tpu.memory_space<vmem>>) attributes {dimension_semantics = [#tpu.dimension_semantics<parallel>], iteration_bounds = array<i64: 1>, scalar_prefetch = 0 : i64, scratch_operands = 0 : i64, tpu.core_type = #tpu.core_type<tc>, window_params = [{transform_indices = @transform_0, window_bounds = array<i64: 8, 256>}, {transform_indices = @transform_1, window_bounds = array<i64: 8, 256>}]} {
    %c0 = arith.constant 0 : index
    %c0_0 = arith.constant 0 : index
    %0 = vector.load %arg1[%c0, %c0_0] : memref<8x256xf32, #tpu.memory_space<vmem>>, vector<8x256xf32>
    %cst = arith.constant 1.500000e+01 : f32
    %1 = vector.broadcast %cst : f32 to vector<8x256xf32>
    %2 = arith.mulf %0, %1 : vector<8x256xf32>
    %3 = math.roundeven %2 : vector<8x256xf32>
    %cst_1 = arith.constant 1.500000e+01 : f32
    %4 = vector.broadcast %cst_1 : f32 to vector<8x256xf32>
    %5 = arith.divf %3, %4 : vector<8x256xf32>
    %c0_2 = arith.constant 0 : index
    %c0_3 = arith.constant 0 : index
    %6 = vector.load %arg2[%c0_2, %c0_3] : memref<8x256xf32, #tpu.memory_space<vmem>>, vector<8x256xf32>
    tpu.vector_store %arg2[%c0_2, %c0_3], %5 {strides = array<i32>} : memref<8x256xf32, #tpu.memory_space<vmem>>, vector<8x256xf32>,
    return
  }
  func.func @transform_0(%arg0: i32) -> (i32, i32) {
    %c0_i32 = arith.constant 0 : i32
    %c0_i32_0 = arith.constant 0 : i32
    return %arg0, %c0_i32 : i32, i32
  }
  func.func @transform_1(%arg0: i32) -> (i32, i32) {
    %c0_i32 = arith.constant 0 : i32
    %c0_i32_0 = arith.constant 0 : i32
    return %arg0, %c0_i32 : i32, i32
  }
}

</mosaic_0001>

<bundles_post_ra>
// kernel: tpu_custom_call.1
= control target key start
LH: loop header
LB: loop body
LE: loop exit
PB: predicated region body
PF: predicated region fallthrough
CT: control target
= control target key end

     0   :  { %6 = vsyncpa [#allocation3], 0  ;;  %s135_s0 = inlined_call_operand.hbm [shape: f32[8,256], index: 0, kind: input, shape index: {}]   ;;  %s136_s1 = inlined_call_operand.hbm [shape: f32[8,256], index: 1, kind: output, shape index: {}]  }
   0x1   :  { %7 = vsyncpa [#allocation4], 0  ;;  %s99_s6 = smov [#allocation2]   ;;  %s51_s10 = scalar_lea.hbm %s135_s0, 256 }
   0x2   :  { %s14_s7 = sshll.u32 %s99_s6, 4  ;;  %p52_p0 = scmp.ne.s32.totalorder %s135_s0, %s51_s10  ;;  %s15_s7 = int_to_ptr.vmem [resolvable:$true] %s14_s7 }
   0x3   :  { %p55_p1 = scmp.lt.u32.totalorder %s51_s10, %s135_s0 }
   0x5   :  { %p57_p2 = pnand %p55_p1, %p52_p0 }
   0x7   :  { %60 = shalt.err (!%p57_p2)
}
   0x8   :  { %s61_s15 = scalar_lea.vmem %s15_s7, 256  ;;  %p66_p4 = scmp.lt.s32.totalorder %s15_s7, %s15_s7 }
   0x9   :  { %p62_p3 = scmp.ne.s32.totalorder %s15_s7, %s61_s15  ;;  %p67_p5 = scmp.lt.s32.totalorder %s61_s15, %s61_s15 }
   0xb   :  { %p68_p6 = por %p67_p5, %p66_p4 }
   0xd   :  { %p69_p7 = pnand %p68_p6, %p62_p3 }
   0xf   :  { %72 = shalt.err (!%p69_p7)
}
  0x10   :  { %17 = dma.hbm_to_vmem [thread:$0]  %s135_s0, 256, %s15_s7, [#allocation3]  }
  0x11   :  { %95 = dma.done.wait [#allocation3], 256  }
  0x12   :  { %96 = vsyncadd [#allocation3], 4294967040  ;;  %v21_v0 = vld [vmem:[#allocation2] sm:$0xff]  ;;  %v22_v1 = vld [vmem:[#allocation2 + $0x8] sm:$0xff]  ;;  %s100_s18 = smov [#allocation5]  }
  0x13   :  { %v23_v2 = vmul.f32 15.0, %v21_v0  ;;  %v24_v3 = vmul.f32 15.0, %v22_v1  ;;  %s38_s19 = sshll.u32 %s100_s18, 4  ;;  %s39_s19 = int_to_ptr.vmem [resolvable:$true] %s38_s19 }
  0x14   :  { %s73_s20 = scalar_lea.vmem %s39_s19, 256  ;;  %p78_p9 = scmp.lt.s32.totalorder %s39_s19, %s39_s19 }
  0x15   :  { %v47_v4 = vround.rtne.f32 %v23_v2  ;;  %v48_v5 = vround.rtne.f32 %v24_v3  ;;  %p74_p8 = scmp.ne.s32.totalorder %s39_s19, %s73_s20  ;;  %p79_p10 = scmp.lt.s32.totalorder %s73_s20, %s73_s20 }
  0x17   :  { %v28_v6 = vmul.f32 0.06666667, %v47_v4  ;;  %v29_v7 = vmul.f32 0.06666667, %v48_v5  ;;  %p80_p11 = por %p79_p10, %p78_p9 }
  0x19   :  { %30 = vst [vmem:[#allocation5] sm:$0xff] %v28_v6  ;;  %31 = vst [vmem:[#allocation5 + $0x8] sm:$0xff] %v29_v7  ;;  %p81_p12 = pnand %p80_p11, %p74_p8 }
  0x1b   :  { %84 = shalt.err (!%p81_p12)
}
  0x1c   :  { %s85_s22 = scalar_lea.hbm %s136_s1, 256 }
  0x1d   :  { %p86_p13 = scmp.ne.s32.totalorder %s136_s1, %s85_s22  ;;  %p89_p0 = scmp.lt.u32.totalorder %s85_s22, %s136_s1 }
  0x1f   :  { %p91_p1 = pnand %p89_p0, %p86_p13 }
  0x21   :  { %94 = shalt.err (!%p91_p1)
}
  0x22   :  { %41 = dma.vmem_to_hbm [thread:$0]  %s39_s19, 256, %s136_s1, [#allocation4]  }
  0x23   :  { %97 = dma.done.wait [#allocation4], 256  }
  0x24   :  { %98 = vsyncadd [#allocation4], 4294967040 }
  0x25   :  { %45 = vsyncpa [#allocation3], 1 }
  0x26   :  { %46 = vsyncpa [#allocation4], 1 }

</bundles_post_ra>
